<compile_context>
chip_gen: v6e
topology: v6e:2x2x1
jax: 0.10.0
libtpu: 0.0.40
codegen_flags: <defaults>
</compile_context>

<pallas_src>
import functools

import numpy as np
import jax
import jax.numpy as jnp
from jax.experimental import pallas as pl
from jax.experimental.pallas import tpu as pltpu


def _sample_block_kernel(x_ref, w_ref, rc_ref, p_ref, o_ref, *, dil, H, W, Nb):
    # x_ref:  (Nb, C_pad, HW)   f32   Nb batch elements, NCHW with spatial flattened (lane-dense)
    # w_ref:  (9, C_out, C_pad) bf16  tap-major weights, w[t, co, ci] with t = kh*3+kw
    # rc_ref: (2, HW)           int32 row / col index of each flattened spatial position
    # p_ref:  (C_out, 2)        f32   columns = [gamma, beta]  (conv bias cancels in InstanceNorm)
    # o_ref:  (Nb, C_out, HW)   f32
    C_pad = x_ref.shape[1]
    C_out = o_ref.shape[1]
    HW = H * W

    # ---- per-grid-step setup (shared by all Nb images, hoisted once) ------------------------
    row = rc_ref[0:1, :]                      # (1, HW) int32
    col = rc_ref[1:2, :]                      # (1, HW) int32

    # Tap table: static lane offset + 0/1 validity mask reproducing the conv's zero padding.
    taps = []
    for kh in range(3):
        dh = (kh - 1) * dil
        rv = (row + dh >= 0) & (row + dh < H)
        for kw in range(3):
            dw = (kw - 1) * dil
            if dh == 0 and dw == 0:
                taps.append((0, None))        # center tap: no shift, always valid
                continue
            cv = (col + dw >= 0) & (col + dw < W)
            valid = jnp.broadcast_to(rv & cv, (C_pad, HW))    # broadcast hoisted out of loops
            taps.append((dh * W + dw, valid))

    w_taps = [w_ref[t] for t in range(9)]     # 9 x (C_out, C_pad) bf16, hoisted
    gamma = p_ref[:, 0:1]                     # (C_out, 1)
    beta = p_ref[:, 1:2]                      # (C_out, 1)

    # ---- per-image work (static unroll over Nb images per grid step) ------------------------
    for b in range(Nb):
        x = x_ref[b]                          # (C_pad, HW) f32, lane-dense load
        acc = jnp.zeros((C_out, HW), jnp.float32)
        for t in range(9):
            off, valid = taps[t]
            if off == 0:
                tap = x
            else:
                shifted = jnp.roll(x, -off, axis=1)          # lane rotation (XLU)
                tap = jnp.where(valid, shifted, 0.0)         # zero padding, Inf/NaN safe
            # (C_out, C_pad) @ (C_pad, HW) bf16 MXU dot, f32 accumulation (no scratch, no im2col).
            acc = acc + jnp.dot(w_taps[t], tap.astype(jnp.bfloat16),
                                preferred_element_type=jnp.float32)

        # InstanceNorm2d: per-(n, c) stats over H*W (lane reduction), biased variance, eps=1e-5.
        mean = jnp.mean(acc, axis=1, keepdims=True)                   # (C_out, 1)
        var = jnp.mean((acc - mean) ** 2, axis=1, keepdims=True)      # (C_out, 1)
        inv_std = jax.lax.rsqrt(var + 1e-5)                           # EUP
        scale = gamma * inv_std                                       # (C_out, 1)
        shift = beta - mean * scale                                   # (C_out, 1)
        o_ref[b] = jnp.maximum(acc * scale + shift, 0.0)              # ReLU, lane-dense store


def _pick_nb(n_batch, per_image_block_bytes, budget_bytes=8 << 20):
    """Images per grid step: amortize per-step overhead, keep grid >= 2 (v7x has 2 TCs)."""
    if n_batch <= 1:
        return max(n_batch, 1)
    max_nb = max(1, budget_bytes // max(per_image_block_bytes, 1))
    best = 1
    for nb in range(1, n_batch + 1):
        if nb > max_nb:
            break
        if n_batch % nb == 0 and n_batch // nb >= 2:
            best = nb
    return best


def sample_block_forward(x_nchw, weight, bias, gamma, beta, *, size, dil):
    """Forward of sample_block. x_nchw: (N, C_in, H, W) float32. Returns (N, C_out, H, W)."""
    if size == 'DOWN':
        # nn.Conv2d weight: (C_out, C_in, 3, 3)
        w_eff = weight
    elif size == 'UP':
        # nn.ConvTranspose2d weight: (C_in, C_out, 3, 3). With stride=1, padding=dil,
        # dilation=dil the transposed conv equals a regular dilated conv (padding=dil)
        # with the kernel spatially flipped and in/out channels swapped.
        w_eff = jnp.flip(weight, axis=(2, 3)).transpose(1, 0, 2, 3)   # (C_out, C_in, 3, 3)
    else:
        raise ValueError(size)
    del bias   # per-channel constant added before InstanceNorm cancels exactly in (y - mean)

    C_out, C_in = int(w_eff.shape[0]), int(w_eff.shape[1])
    N, _, H, W = (int(s) for s in x_nchw.shape)
    HW = H * W

    # Pad channels to the 8-row sublane tile so per-tap operands are tile-friendly.
    C_pad = -(-C_in // 8) * 8

    # Tap-major weights: w_taps[t, co, ci] = w_eff[co, ci, kh, kw], t = kh*3+kw.  bf16 for MXU.
    w_taps = jnp.transpose(w_eff, (2, 3, 0, 1)).reshape(9, C_out, C_in)
    if C_pad != C_in:
        w_taps = jnp.pad(w_taps, ((0, 0), (0, 0), (0, C_pad - C_in)))
    w_taps = w_taps.astype(jnp.bfloat16)

    params = jnp.stack([gamma, beta], axis=1).astype(jnp.float32)     # (C_out, 2)

    # Tiny (2, HW) int32 row/col index table (avoids both a (9, HW) mask DMA and vector int div).
    rows = np.repeat(np.arange(H, dtype=np.int32), W)
    cols = np.tile(np.arange(W, dtype=np.int32), H)
    rowcol = jnp.asarray(np.stack([rows, cols]))                      # (2, HW)

    # Free reshape (contiguous trailing-dim collapse): stays in NCHW, no transpose.
    x_flat = x_nchw.reshape(N, C_in, HW).astype(jnp.float32)
    if C_pad != C_in:
        x_flat = jnp.pad(x_flat, ((0, 0), (0, C_pad - C_in), (0, 0)))

    per_image_block_bytes = 2 * (C_pad + C_out) * HW * 4              # double-buffered x + out
    Nb = _pick_nb(N, per_image_block_bytes)
    grid = (N // Nb,)

    # Scoped-VMEM request: double-buffered blocks + live intermediates, with headroom.
    block_bytes = 2 * (Nb * C_pad * HW * 4 + Nb * C_out * HW * 4
                       + 9 * C_out * C_pad * 2 + 2 * HW * 4 + C_out * 2 * 4)
    interm_bytes = (3 * C_pad + 2 * C_out) * HW * 4
    vmem_limit = int(min(100 << 20, max(2 * (block_bytes + interm_bytes), 32 << 20)))

    kernel = functools.partial(_sample_block_kernel, dil=dil, H=H, W=W, Nb=Nb)
    out = pl.pallas_call(
        kernel,
        out_shape=jax.ShapeDtypeStruct((N, C_out, HW), jnp.float32),
        grid_spec=pltpu.PrefetchScalarGridSpec(
            num_scalar_prefetch=0,
            grid=grid,
            in_specs=[
                pl.BlockSpec((Nb, C_pad, HW), lambda n: (n, 0, 0)),
                pl.BlockSpec((9, C_out, C_pad), lambda n: (0, 0, 0)),
                pl.BlockSpec((2, HW), lambda n: (0, 0)),
                pl.BlockSpec((C_out, 2), lambda n: (0, 0)),
            ],
            out_specs=pl.BlockSpec((Nb, C_out, HW), lambda n: (n, 0, 0)),
        ),
        compiler_params=pltpu.CompilerParams(
            dimension_semantics=("parallel",),
            vmem_limit_bytes=vmem_limit,
        ),
    )(x_flat, w_taps, rowcol, params)

    return out.reshape(N, C_out, H, W)   # free reshape, already NCHW


def _reference_conv_in_relu(x_nchw, w_oihw, bias, gamma, beta, dil):
    """Pure-JAX f32 reference: dilated conv (+bias) + InstanceNorm2d(affine) + ReLU (NCHW)."""
    y = jax.lax.conv_general_dilated(
        x_nchw, w_oihw,
        window_strides=(1, 1),
        padding=((dil, dil), (dil, dil)),
        rhs_dilation=(dil, dil),
        dimension_numbers=('NCHW', 'OIHW', 'NCHW'),
        precision=jax.lax.Precision.HIGHEST,
    )
    y = y + bias[None, :, None, None]
    mean = y.mean(axis=(2, 3), keepdims=True)
    var = ((y - mean) ** 2).mean(axis=(2, 3), keepdims=True)
    y = (y - mean) * jax.lax.rsqrt(var + 1e-5)
    y = y * gamma[None, :, None, None] + beta[None, :, None, None]
    return jnp.maximum(y, 0.0)


if __name__ == "__main__":
    key = jax.random.PRNGKey(0)
    N, C_in, C_out, H, W, dil = 2, 4, 8, 16, 16, 2
    ks = jax.random.split(key, 8)

    x = jax.random.normal(ks[0], (N, C_in, H, W), jnp.float32)

    # deterministic "parameters"
    w_down = 0.1 * jax.random.normal(ks[1], (C_out, C_in, 3, 3), jnp.float32)   # Conv2d weight
    b_down = 0.05 * jax.random.normal(ks[2], (C_out,), jnp.float32)
    gamma = 1.0 + 0.1 * jax.random.normal(ks[3], (C_out,), jnp.float32)         # InstanceNorm affine
    beta = 0.1 * jax.random.normal(ks[4], (C_out,), jnp.float32)
    w_up = 0.1 * jax.random.normal(ks[5], (C_in, C_out, 3, 3), jnp.float32)     # ConvTranspose2d weight
    b_up = 0.05 * jax.random.normal(ks[6], (C_out,), jnp.float32)

    # NOTE: kernel uses bf16 MXU operands; the f32/HIGHEST reference therefore differs at the
    # ~1e-3..1e-2 level, so tolerances are set accordingly.  (The kernel drops the conv bias,
    # which cancels exactly inside InstanceNorm; the reference keeps it, proving equivalence.)
    TOL = dict(atol=3e-2, rtol=3e-2)

    # size == 'DOWN'
    out_down = jax.block_until_ready(
        sample_block_forward(x, w_down, b_down, gamma, beta, size='DOWN', dil=dil))
    ref_down = _reference_conv_in_relu(x, w_down, b_down, gamma, beta, dil)
    assert out_down.shape == (N, C_out, H, W)
    assert jnp.allclose(out_down, ref_down, **TOL)

    # size == 'UP'  (stride-1 transposed conv == conv with flipped, IO-swapped kernel)
    out_up = jax.block_until_ready(
        sample_block_forward(x, w_up, b_up, gamma, beta, size='UP', dil=dil))
    w_up_eff = jnp.flip(w_up, axis=(2, 3)).transpose(1, 0, 2, 3)
    ref_up = _reference_conv_in_relu(x, w_up_eff, b_up, gamma, beta, dil)
    assert out_up.shape == (N, C_out, H, W)
    assert jnp.allclose(out_up, ref_up, **TOL)

    print("KERNEL_OK")
</pallas_src>

<mosaic_0001>
module attributes {stable_mosaic.version = 11 : i64} {
  func.func @_sample_block_kernel(%arg0: i32, %arg1: memref<1x8x256xf32, #tpu.memory_space<vmem>>, %arg2: memref<9x8x8xbf16, #tpu.memory_space<vmem>>, %arg3: memref<2x256xi32, #tpu.memory_space<vmem>>, %arg4: memref<8x2xf32, #tpu.memory_space<vmem>>, %arg5: memref<1x8x256xf32, #tpu.memory_space<vmem>>) attributes {dimension_semantics = [#tpu.dimension_semantics<parallel>], iteration_bounds = array<i64: 2>, scalar_prefetch = 0 : i64, scratch_operands = 0 : i64, tpu.core_type = #tpu.core_type<tc>, window_params = [{transform_indices = @transform_0, window_bounds = array<i64: 1, 8, 256>}, {pipeline_mode = #tpu.pipeline_mode<synchronous>, transform_indices = @transform_1, window_bounds = array<i64: 9, 8, 8>}, {pipeline_mode = #tpu.pipeline_mode<synchronous>, transform_indices = @transform_2, window_bounds = array<i64: 2, 256>}, {pipeline_mode = #tpu.pipeline_mode<synchronous>, transform_indices = @transform_3, window_bounds = array<i64: 8, 2>}, {transform_indices = @transform_4, window_bounds = array<i64: 1, 8, 256>}]} {
    %c0 = arith.constant 0 : index
    %c0_0 = arith.constant 0 : index
    %0 = vector.load %arg3[%c0, %c0_0] : memref<2x256xi32, #tpu.memory_space<vmem>>, vector<1x256xi32>
    %c1 = arith.constant 1 : index
    %c0_1 = arith.constant 0 : index
    %1 = vector.load %arg3[%c1, %c0_1] : memref<2x256xi32, #tpu.memory_space<vmem>>, vector<1x256xi32>
    %c-2_i32 = arith.constant -2 : i32
    %2 = vector.broadcast %c-2_i32 : i32 to vector<1x256xi32>
    %3 = arith.addi %0, %2 : vector<1x256xi32>
    %c0_i32 = arith.constant 0 : i32
    %4 = vector.broadcast %c0_i32 : i32 to vector<1x256xi32>
    %5 = arith.cmpi sge, %3, %4 : vector<1x256xi32>
    %c-2_i32_2 = arith.constant -2 : i32
    %6 = vector.broadcast %c-2_i32_2 : i32 to vector<1x256xi32>
    %7 = arith.addi %0, %6 : vector<1x256xi32>
    %c16_i32 = arith.constant 16 : i32
    %8 = vector.broadcast %c16_i32 : i32 to vector<1x256xi32>
    %9 = arith.cmpi slt, %7, %8 : vector<1x256xi32>
    %10 = arith.andi %5, %9 : vector<1x256xi1>
    %c-2_i32_3 = arith.constant -2 : i32
    %11 = vector.broadcast %c-2_i32_3 : i32 to vector<1x256xi32>
    %12 = arith.addi %1, %11 : vector<1x256xi32>
    %c0_i32_4 = arith.constant 0 : i32
    %13 = vector.broadcast %c0_i32_4 : i32 to vector<1x256xi32>
    %14 = arith.cmpi sge, %12, %13 : vector<1x256xi32>
    %c-2_i32_5 = arith.constant -2 : i32
    %15 = vector.broadcast %c-2_i32_5 : i32 to vector<1x256xi32>
    %16 = arith.addi %1, %15 : vector<1x256xi32>
    %c16_i32_6 = arith.constant 16 : i32
    %17 = vector.broadcast %c16_i32_6 : i32 to vector<1x256xi32>
    %18 = arith.cmpi slt, %16, %17 : vector<1x256xi32>
    %19 = arith.andi %14, %18 : vector<1x256xi1>
    %20 = arith.andi %10, %19 : vector<1x256xi1>
    %21 = vector.shape_cast %20 : vector<1x256xi1> to vector<1x256xi1>
    %22 = vector.broadcast %21 : vector<1x256xi1> to vector<8x256xi1>
    %c0_i32_7 = arith.constant 0 : i32
    %23 = vector.broadcast %c0_i32_7 : i32 to vector<1x256xi32>
    %24 = arith.addi %1, %23 : vector<1x256xi32>
    %c0_i32_8 = arith.constant 0 : i32
    %25 = vector.broadcast %c0_i32_8 : i32 to vector<1x256xi32>
    %26 = arith.cmpi sge, %24, %25 : vector<1x256xi32>
    %c0_i32_9 = arith.constant 0 : i32
    %27 = vector.broadcast %c0_i32_9 : i32 to vector<1x256xi32>
    %28 = arith.addi %1, %27 : vector<1x256xi32>
    %c16_i32_10 = arith.constant 16 : i32
    %29 = vector.broadcast %c16_i32_10 : i32 to vector<1x256xi32>
    %30 = arith.cmpi slt, %28, %29 : vector<1x256xi32>
    %31 = arith.andi %26, %30 : vector<1x256xi1>
    %32 = arith.andi %10, %31 : vector<1x256xi1>
    %33 = vector.shape_cast %32 : vector<1x256xi1> to vector<1x256xi1>
    %34 = vector.broadcast %33 : vector<1x256xi1> to vector<8x256xi1>
    %c2_i32 = arith.constant 2 : i32
    %35 = vector.broadcast %c2_i32 : i32 to vector<1x256xi32>
    %36 = arith.addi %1, %35 : vector<1x256xi32>
    %c0_i32_11 = arith.constant 0 : i32
    %37 = vector.broadcast %c0_i32_11 : i32 to vector<1x256xi32>
    %38 = arith.cmpi sge, %36, %37 : vector<1x256xi32>
    %c2_i32_12 = arith.constant 2 : i32
    %39 = vector.broadcast %c2_i32_12 : i32 to vector<1x256xi32>
    %40 = arith.addi %1, %39 : vector<1x256xi32>
    %c16_i32_13 = arith.constant 16 : i32
    %41 = vector.broadcast %c16_i32_13 : i32 to vector<1x256xi32>
    %42 = arith.cmpi slt, %40, %41 : vector<1x256xi32>
    %43 = arith.andi %38, %42 : vector<1x256xi1>
    %44 = arith.andi %10, %43 : vector<1x256xi1>
    %45 = vector.shape_cast %44 : vector<1x256xi1> to vector<1x256xi1>
    %46 = vector.broadcast %45 : vector<1x256xi1> to vector<8x256xi1>
    %c0_i32_14 = arith.constant 0 : i32
    %47 = vector.broadcast %c0_i32_14 : i32 to vector<1x256xi32>
    %48 = arith.addi %0, %47 : vector<1x256xi32>
    %c0_i32_15 = arith.constant 0 : i32
    %49 = vector.broadcast %c0_i32_15 : i32 to vector<1x256xi32>
    %50 = arith.cmpi sge, %48, %49 : vector<1x256xi32>
    %c0_i32_16 = arith.constant 0 : i32
    %51 = vector.broadcast %c0_i32_16 : i32 to vector<1x256xi32>
    %52 = arith.addi %0, %51 : vector<1x256xi32>
    %c16_i32_17 = arith.constant 16 : i32
    %53 = vector.broadcast %c16_i32_17 : i32 to vector<1x256xi32>
    %54 = arith.cmpi slt, %52, %53 : vector<1x256xi32>
    %55 = arith.andi %50, %54 : vector<1x256xi1>
    %c-2_i32_18 = arith.constant -2 : i32
    %56 = vector.broadcast %c-2_i32_18 : i32 to vector<1x256xi32>
    %57 = arith.addi %1, %56 : vector<1x256xi32>
    %c0_i32_19 = arith.constant 0 : i32
    %58 = vector.broadcast %c0_i32_19 : i32 to vector<1x256xi32>
    %59 = arith.cmpi sge, %57, %58 : vector<1x256xi32>
    %c-2_i32_20 = arith.constant -2 : i32
    %60 = vector.broadcast %c-2_i32_20 : i32 to vector<1x256xi32>
    %61 = arith.addi %1, %60 : vector<1x256xi32>
    %c16_i32_21 = arith.constant 16 : i32
    %62 = vector.broadcast %c16_i32_21 : i32 to vector<1x256xi32>
    %63 = arith.cmpi slt, %61, %62 : vector<1x256xi32>
    %64 = arith.andi %59, %63 : vector<1x256xi1>
    %65 = arith.andi %55, %64 : vector<1x256xi1>
    %66 = vector.shape_cast %65 : vector<1x256xi1> to vector<1x256xi1>
    %67 = vector.broadcast %66 : vector<1x256xi1> to vector<8x256xi1>
    %c2_i32_22 = arith.constant 2 : i32
    %68 = vector.broadcast %c2_i32_22 : i32 to vector<1x256xi32>
    %69 = arith.addi %1, %68 : vector<1x256xi32>
    %c0_i32_23 = arith.constant 0 : i32
    %70 = vector.broadcast %c0_i32_23 : i32 to vector<1x256xi32>
    %71 = arith.cmpi sge, %69, %70 : vector<1x256xi32>
    %c2_i32_24 = arith.constant 2 : i32
    %72 = vector.broadcast %c2_i32_24 : i32 to vector<1x256xi32>
    %73 = arith.addi %1, %72 : vector<1x256xi32>
    %c16_i32_25 = arith.constant 16 : i32
    %74 = vector.broadcast %c16_i32_25 : i32 to vector<1x256xi32>
    %75 = arith.cmpi slt, %73, %74 : vector<1x256xi32>
    %76 = arith.andi %71, %75 : vector<1x256xi1>
    %77 = arith.andi %55, %76 : vector<1x256xi1>
    %78 = vector.shape_cast %77 : vector<1x256xi1> to vector<1x256xi1>
    %79 = vector.broadcast %78 : vector<1x256xi1> to vector<8x256xi1>
    %c2_i32_26 = arith.constant 2 : i32
    %80 = vector.broadcast %c2_i32_26 : i32 to vector<1x256xi32>
    %81 = arith.addi %0, %80 : vector<1x256xi32>
    %c0_i32_27 = arith.constant 0 : i32
    %82 = vector.broadcast %c0_i32_27 : i32 to vector<1x256xi32>
    %83 = arith.cmpi sge, %81, %82 : vector<1x256xi32>
    %c2_i32_28 = arith.constant 2 : i32
    %84 = vector.broadcast %c2_i32_28 : i32 to vector<1x256xi32>
    %85 = arith.addi %0, %84 : vector<1x256xi32>
    %c16_i32_29 = arith.constant 16 : i32
    %86 = vector.broadcast %c16_i32_29 : i32 to vector<1x256xi32>
    %87 = arith.cmpi slt, %85, %86 : vector<1x256xi32>
    %88 = arith.andi %83, %87 : vector<1x256xi1>
    %c-2_i32_30 = arith.constant -2 : i32
    %89 = vector.broadcast %c-2_i32_30 : i32 to vector<1x256xi32>
    %90 = arith.addi %1, %89 : vector<1x256xi32>
    %c0_i32_31 = arith.constant 0 : i32
    %91 = vector.broadcast %c0_i32_31 : i32 to vector<1x256xi32>
    %92 = arith.cmpi sge, %90, %91 : vector<1x256xi32>
    %c-2_i32_32 = arith.constant -2 : i32
    %93 = vector.broadcast %c-2_i32_32 : i32 to vector<1x256xi32>
    %94 = arith.addi %1, %93 : vector<1x256xi32>
    %c16_i32_33 = arith.constant 16 : i32
    %95 = vector.broadcast %c16_i32_33 : i32 to vector<1x256xi32>
    %96 = arith.cmpi slt, %94, %95 : vector<1x256xi32>
    %97 = arith.andi %92, %96 : vector<1x256xi1>
    %98 = arith.andi %88, %97 : vector<1x256xi1>
    %99 = vector.shape_cast %98 : vector<1x256xi1> to vector<1x256xi1>
    %100 = vector.broadcast %99 : vector<1x256xi1> to vector<8x256xi1>
    %c0_i32_34 = arith.constant 0 : i32
    %101 = vector.broadcast %c0_i32_34 : i32 to vector<1x256xi32>
    %102 = arith.addi %1, %101 : vector<1x256xi32>
    %c0_i32_35 = arith.constant 0 : i32
    %103 = vector.broadcast %c0_i32_35 : i32 to vector<1x256xi32>
    %104 = arith.cmpi sge, %102, %103 : vector<1x256xi32>
    %c0_i32_36 = arith.constant 0 : i32
    %105 = vector.broadcast %c0_i32_36 : i32 to vector<1x256xi32>
    %106 = arith.addi %1, %105 : vector<1x256xi32>
    %c16_i32_37 = arith.constant 16 : i32
    %107 = vector.broadcast %c16_i32_37 : i32 to vector<1x256xi32>
    %108 = arith.cmpi slt, %106, %107 : vector<1x256xi32>
    %109 = arith.andi %104, %108 : vector<1x256xi1>
    %110 = arith.andi %88, %109 : vector<1x256xi1>
    %111 = vector.shape_cast %110 : vector<1x256xi1> to vector<1x256xi1>
    %112 = vector.broadcast %111 : vector<1x256xi1> to vector<8x256xi1>
    %c2_i32_38 = arith.constant 2 : i32
    %113 = vector.broadcast %c2_i32_38 : i32 to vector<1x256xi32>
    %114 = arith.addi %1, %113 : vector<1x256xi32>
    %c0_i32_39 = arith.constant 0 : i32
    %115 = vector.broadcast %c0_i32_39 : i32 to vector<1x256xi32>
    %116 = arith.cmpi sge, %114, %115 : vector<1x256xi32>
    %c2_i32_40 = arith.constant 2 : i32
    %117 = vector.broadcast %c2_i32_40 : i32 to vector<1x256xi32>
    %118 = arith.addi %1, %117 : vector<1x256xi32>
    %c16_i32_41 = arith.constant 16 : i32
    %119 = vector.broadcast %c16_i32_41 : i32 to vector<1x256xi32>
    %120 = arith.cmpi slt, %118, %119 : vector<1x256xi32>
    %121 = arith.andi %116, %120 : vector<1x256xi1>
    %122 = arith.andi %88, %121 : vector<1x256xi1>
    %123 = vector.shape_cast %122 : vector<1x256xi1> to vector<1x256xi1>
    %124 = vector.broadcast %123 : vector<1x256xi1> to vector<8x256xi1>
    %c0_42 = arith.constant 0 : index
    %c0_43 = arith.constant 0 : index
    %c0_44 = arith.constant 0 : index
    %125 = vector.load %arg2[%c0_42, %c0_43, %c0_44] : memref<9x8x8xbf16, #tpu.memory_space<vmem>>, vector<1x8x8xbf16>
    %126 = vector.shape_cast %125 : vector<1x8x8xbf16> to vector<8x8xbf16>
    %c1_45 = arith.constant 1 : index
    %c0_46 = arith.constant 0 : index
    %c0_47 = arith.constant 0 : index
    %127 = vector.load %arg2[%c1_45, %c0_46, %c0_47] : memref<9x8x8xbf16, #tpu.memory_space<vmem>>, vector<1x8x8xbf16>
    %128 = vector.shape_cast %127 : vector<1x8x8xbf16> to vector<8x8xbf16>
    %c2 = arith.constant 2 : index
    %c0_48 = arith.constant 0 : index
    %c0_49 = arith.constant 0 : index
    %129 = vector.load %arg2[%c2, %c0_48, %c0_49] : memref<9x8x8xbf16, #tpu.memory_space<vmem>>, vector<1x8x8xbf16>
    %130 = vector.shape_cast %129 : vector<1x8x8xbf16> to vector<8x8xbf16>
    %c3 = arith.constant 3 : index
    %c0_50 = arith.constant 0 : index
    %c0_51 = arith.constant 0 : index
    %131 = vector.load %arg2[%c3, %c0_50, %c0_51] : memref<9x8x8xbf16, #tpu.memory_space<vmem>>, vector<1x8x8xbf16>
    %132 = vector.shape_cast %131 : vector<1x8x8xbf16> to vector<8x8xbf16>
    %c4 = arith.constant 4 : index
    %c0_52 = arith.constant 0 : index
    %c0_53 = arith.constant 0 : index
    %133 = vector.load %arg2[%c4, %c0_52, %c0_53] : memref<9x8x8xbf16, #tpu.memory_space<vmem>>, vector<1x8x8xbf16>
    %134 = vector.shape_cast %133 : vector<1x8x8xbf16> to vector<8x8xbf16>
    %c5 = arith.constant 5 : index
    %c0_54 = arith.constant 0 : index
    %c0_55 = arith.constant 0 : index
    %135 = vector.load %arg2[%c5, %c0_54, %c0_55] : memref<9x8x8xbf16, #tpu.memory_space<vmem>>, vector<1x8x8xbf16>
    %136 = vector.shape_cast %135 : vector<1x8x8xbf16> to vector<8x8xbf16>
    %c6 = arith.constant 6 : index
    %c0_56 = arith.constant 0 : index
    %c0_57 = arith.constant 0 : index
    %137 = vector.load %arg2[%c6, %c0_56, %c0_57] : memref<9x8x8xbf16, #tpu.memory_space<vmem>>, vector<1x8x8xbf16>
    %138 = vector.shape_cast %137 : vector<1x8x8xbf16> to vector<8x8xbf16>
    %c7 = arith.constant 7 : index
    %c0_58 = arith.constant 0 : index
    %c0_59 = arith.constant 0 : index
    %139 = vector.load %arg2[%c7, %c0_58, %c0_59] : memref<9x8x8xbf16, #tpu.memory_space<vmem>>, vector<1x8x8xbf16>
    %140 = vector.shape_cast %139 : vector<1x8x8xbf16> to vector<8x8xbf16>
    %c8 = arith.constant 8 : index
    %c0_60 = arith.constant 0 : index
    %c0_61 = arith.constant 0 : index
    %141 = vector.load %arg2[%c8, %c0_60, %c0_61] : memref<9x8x8xbf16, #tpu.memory_space<vmem>>, vector<1x8x8xbf16>
    %142 = vector.shape_cast %141 : vector<1x8x8xbf16> to vector<8x8xbf16>
    %c0_62 = arith.constant 0 : index
    %c0_63 = arith.constant 0 : index
    %143 = vector.load %arg4[%c0_62, %c0_63] : memref<8x2xf32, #tpu.memory_space<vmem>>, vector<8x1xf32>
    %c0_64 = arith.constant 0 : index
    %c1_65 = arith.constant 1 : index
    %144 = vector.load %arg4[%c0_64, %c1_65] : memref<8x2xf32, #tpu.memory_space<vmem>>, vector<8x1xf32>
    %c0_66 = arith.constant 0 : index
    %c0_67 = arith.constant 0 : index
    %c0_68 = arith.constant 0 : index
    %145 = vector.load %arg1[%c0_66, %c0_67, %c0_68] : memref<1x8x256xf32, #tpu.memory_space<vmem>>, vector<1x8x256xf32>
    %146 = vector.shape_cast %145 : vector<1x8x256xf32> to vector<8x256xf32>
    %cst = arith.constant 0.000000e+00 : f32
    %147 = vector.broadcast %cst : f32 to vector<8x256xf32>
    %148 = vector.extract_strided_slice %146 {offsets = [0, 222], sizes = [8, 34], strides = [1, 1]} : vector<8x256xf32> to vector<8x34xf32>
    %149 = vector.extract_strided_slice %146 {offsets = [0, 0], sizes = [8, 222], strides = [1, 1]} : vector<8x256xf32> to vector<8x222xf32>
    %150 = tpu.concatenate %148, %149 in 1 : vector<8x34xf32>, vector<8x222xf32> -> vector<8x256xf32>
    %cst_69 = arith.constant 0.000000e+00 : f32
    %151 = vector.broadcast %cst_69 : f32 to vector<8x256xf32>
    %152 = arith.select %22, %150, %151 : vector<8x256xi1>, vector<8x256xf32>
    %153 = arith.truncf %152 : vector<8x256xf32> to vector<8x256xbf16>
    %cst_70 = arith.constant dense<0.000000e+00> : vector<8x256xf32>
    %154 = tpu.matmul %126, %153, %cst_70 {dimension_numbers = #tpu.dot_dimension_numbers<[1], [0], [0], [1], [0, 0, 1, 1], [], []>} : vector<8x8xbf16>, vector<8x256xbf16>, vector<8x256xf32> -> vector<8x256xf32>
    %155 = arith.addf %147, %154 : vector<8x256xf32>
    %156 = vector.extract_strided_slice %146 {offsets = [0, 224], sizes = [8, 32], strides = [1, 1]} : vector<8x256xf32> to vector<8x32xf32>
    %157 = vector.extract_strided_slice %146 {offsets = [0, 0], sizes = [8, 224], strides = [1, 1]} : vector<8x256xf32> to vector<8x224xf32>
    %158 = tpu.concatenate %156, %157 in 1 : vector<8x32xf32>, vector<8x224xf32> -> vector<8x256xf32>
    %cst_71 = arith.constant 0.000000e+00 : f32
    %159 = vector.broadcast %cst_71 : f32 to vector<8x256xf32>
    %160 = arith.select %34, %158, %159 : vector<8x256xi1>, vector<8x256xf32>
    %161 = arith.truncf %160 : vector<8x256xf32> to vector<8x256xbf16>
    %cst_72 = arith.constant dense<0.000000e+00> : vector<8x256xf32>
    %162 = tpu.matmul %128, %161, %cst_72 {dimension_numbers = #tpu.dot_dimension_numbers<[1], [0], [0], [1], [0, 0, 1, 1], [], []>} : vector<8x8xbf16>, vector<8x256xbf16>, vector<8x256xf32> -> vector<8x256xf32>
    %163 = arith.addf %155, %162 : vector<8x256xf32>
    %164 = vector.extract_strided_slice %146 {offsets = [0, 226], sizes = [8, 30], strides = [1, 1]} : vector<8x256xf32> to vector<8x30xf32>
    %165 = vector.extract_strided_slice %146 {offsets = [0, 0], sizes = [8, 226], strides = [1, 1]} : vector<8x256xf32> to vector<8x226xf32>
    %166 = tpu.concatenate %164, %165 in 1 : vector<8x30xf32>, vector<8x226xf32> -> vector<8x256xf32>
    %cst_73 = arith.constant 0.000000e+00 : f32
    %167 = vector.broadcast %cst_73 : f32 to vector<8x256xf32>
    %168 = arith.select %46, %166, %167 : vector<8x256xi1>, vector<8x256xf32>
    %169 = arith.truncf %168 : vector<8x256xf32> to vector<8x256xbf16>
    %cst_74 = arith.constant dense<0.000000e+00> : vector<8x256xf32>
    %170 = tpu.matmul %130, %169, %cst_74 {dimension_numbers = #tpu.dot_dimension_numbers<[1], [0], [0], [1], [0, 0, 1, 1], [], []>} : vector<8x8xbf16>, vector<8x256xbf16>, vector<8x256xf32> -> vector<8x256xf32>
    %171 = arith.addf %163, %170 : vector<8x256xf32>
    %172 = vector.extract_strided_slice %146 {offsets = [0, 254], sizes = [8, 2], strides = [1, 1]} : vector<8x256xf32> to vector<8x2xf32>
    %173 = vector.extract_strided_slice %146 {offsets = [0, 0], sizes = [8, 254], strides = [1, 1]} : vector<8x256xf32> to vector<8x254xf32>
    %174 = tpu.concatenate %172, %173 in 1 : vector<8x2xf32>, vector<8x254xf32> -> vector<8x256xf32>
    %cst_75 = arith.constant 0.000000e+00 : f32
    %175 = vector.broadcast %cst_75 : f32 to vector<8x256xf32>
    %176 = arith.select %67, %174, %175 : vector<8x256xi1>, vector<8x256xf32>
    %177 = arith.truncf %176 : vector<8x256xf32> to vector<8x256xbf16>
    %cst_76 = arith.constant dense<0.000000e+00> : vector<8x256xf32>
    %178 = tpu.matmul %132, %177, %cst_76 {dimension_numbers = #tpu.dot_dimension_numbers<[1], [0], [0], [1], [0, 0, 1, 1], [], []>} : vector<8x8xbf16>, vector<8x256xbf16>, vector<8x256xf32> -> vector<8x256xf32>
    %179 = arith.addf %171, %178 : vector<8x256xf32>
    %180 = arith.truncf %146 : vector<8x256xf32> to vector<8x256xbf16>
    %cst_77 = arith.constant dense<0.000000e+00> : vector<8x256xf32>
    %181 = tpu.matmul %134, %180, %cst_77 {dimension_numbers = #tpu.dot_dimension_numbers<[1], [0], [0], [1], [0, 0, 1, 1], [], []>} : vector<8x8xbf16>, vector<8x256xbf16>, vector<8x256xf32> -> vector<8x256xf32>
    %182 = arith.addf %179, %181 : vector<8x256xf32>
    %183 = vector.extract_strided_slice %146 {offsets = [0, 2], sizes = [8, 254], strides = [1, 1]} : vector<8x256xf32> to vector<8x254xf32>
    %184 = vector.extract_strided_slice %146 {offsets = [0, 0], sizes = [8, 2], strides = [1, 1]} : vector<8x256xf32> to vector<8x2xf32>
    %185 = tpu.concatenate %183, %184 in 1 : vector<8x254xf32>, vector<8x2xf32> -> vector<8x256xf32>
    %cst_78 = arith.constant 0.000000e+00 : f32
    %186 = vector.broadcast %cst_78 : f32 to vector<8x256xf32>
    %187 = arith.select %79, %185, %186 : vector<8x256xi1>, vector<8x256xf32>
    %188 = arith.truncf %187 : vector<8x256xf32> to vector<8x256xbf16>
    %cst_79 = arith.constant dense<0.000000e+00> : vector<8x256xf32>
    %189 = tpu.matmul %136, %188, %cst_79 {dimension_numbers = #tpu.dot_dimension_numbers<[1], [0], [0], [1], [0, 0, 1, 1], [], []>} : vector<8x8xbf16>, vector<8x256xbf16>, vector<8x256xf32> -> vector<8x256xf32>
    %190 = arith.addf %182, %189 : vector<8x256xf32>
    %191 = vector.extract_strided_slice %146 {offsets = [0, 30], sizes = [8, 226], strides = [1, 1]} : vector<8x256xf32> to vector<8x226xf32>
    %192 = vector.extract_strided_slice %146 {offsets = [0, 0], sizes = [8, 30], strides = [1, 1]} : vector<8x256xf32> to vector<8x30xf32>
    %193 = tpu.concatenate %191, %192 in 1 : vector<8x226xf32>, vector<8x30xf32> -> vector<8x256xf32>
    %cst_80 = arith.constant 0.000000e+00 : f32
    %194 = vector.broadcast %cst_80 : f32 to vector<8x256xf32>
    %195 = arith.select %100, %193, %194 : vector<8x256xi1>, vector<8x256xf32>
    %196 = arith.truncf %195 : vector<8x256xf32> to vector<8x256xbf16>
    %cst_81 = arith.constant dense<0.000000e+00> : vector<8x256xf32>
    %197 = tpu.matmul %138, %196, %cst_81 {dimension_numbers = #tpu.dot_dimension_numbers<[1], [0], [0], [1], [0, 0, 1, 1], [], []>} : vector<8x8xbf16>, vector<8x256xbf16>, vector<8x256xf32> -> vector<8x256xf32>
    %198 = arith.addf %190, %197 : vector<8x256xf32>
    %199 = vector.extract_strided_slice %146 {offsets = [0, 32], sizes = [8, 224], strides = [1, 1]} : vector<8x256xf32> to vector<8x224xf32>
    %200 = vector.extract_strided_slice %146 {offsets = [0, 0], sizes = [8, 32], strides = [1, 1]} : vector<8x256xf32> to vector<8x32xf32>
    %201 = tpu.concatenate %199, %200 in 1 : vector<8x224xf32>, vector<8x32xf32> -> vector<8x256xf32>
    %cst_82 = arith.constant 0.000000e+00 : f32
    %202 = vector.broadcast %cst_82 : f32 to vector<8x256xf32>
    %203 = arith.select %112, %201, %202 : vector<8x256xi1>, vector<8x256xf32>
    %204 = arith.truncf %203 : vector<8x256xf32> to vector<8x256xbf16>
    %cst_83 = arith.constant dense<0.000000e+00> : vector<8x256xf32>
    %205 = tpu.matmul %140, %204, %cst_83 {dimension_numbers = #tpu.dot_dimension_numbers<[1], [0], [0], [1], [0, 0, 1, 1], [], []>} : vector<8x8xbf16>, vector<8x256xbf16>, vector<8x256xf32> -> vector<8x256xf32>
    %206 = arith.addf %198, %205 : vector<8x256xf32>
    %207 = vector.extract_strided_slice %146 {offsets = [0, 34], sizes = [8, 222], strides = [1, 1]} : vector<8x256xf32> to vector<8x222xf32>
    %208 = vector.extract_strided_slice %146 {offsets = [0, 0], sizes = [8, 34], strides = [1, 1]} : vector<8x256xf32> to vector<8x34xf32>
    %209 = tpu.concatenate %207, %208 in 1 : vector<8x222xf32>, vector<8x34xf32> -> vector<8x256xf32>
    %cst_84 = arith.constant 0.000000e+00 : f32
    %210 = vector.broadcast %cst_84 : f32 to vector<8x256xf32>
    %211 = arith.select %124, %209, %210 : vector<8x256xi1>, vector<8x256xf32>
    %212 = arith.truncf %211 : vector<8x256xf32> to vector<8x256xbf16>
    %cst_85 = arith.constant dense<0.000000e+00> : vector<8x256xf32>
    %213 = tpu.matmul %142, %212, %cst_85 {dimension_numbers = #tpu.dot_dimension_numbers<[1], [0], [0], [1], [0, 0, 1, 1], [], []>} : vector<8x8xbf16>, vector<8x256xbf16>, vector<8x256xf32> -> vector<8x256xf32>
    %214 = arith.addf %206, %213 : vector<8x256xf32>
    %cst_86 = arith.constant dense<0.000000e+00> : vector<8xf32>
    %215 = vector.multi_reduction <add>, %214, %cst_86 [1] : vector<8x256xf32> to vector<8xf32>
    %216 = vector.shape_cast %215 : vector<8xf32> to vector<8x1xf32>
    %cst_87 = arith.constant 2.560000e+02 : f32
    %217 = vector.broadcast %cst_87 : f32 to vector<8x1xf32>
    %218 = arith.divf %216, %217 : vector<8x1xf32>
    %219 = vector.broadcast %218 : vector<8x1xf32> to vector<8x256xf32>
    %220 = arith.subf %214, %219 : vector<8x256xf32>
    %221 = arith.mulf %220, %220 : vector<8x256xf32>
    %cst_88 = arith.constant dense<0.000000e+00> : vector<8xf32>
    %222 = vector.multi_reduction <add>, %221, %cst_88 [1] : vector<8x256xf32> to vector<8xf32>
    %223 = vector.shape_cast %222 : vector<8xf32> to vector<8x1xf32>
    %cst_89 = arith.constant 2.560000e+02 : f32
    %224 = vector.broadcast %cst_89 : f32 to vector<8x1xf32>
    %225 = arith.divf %223, %224 : vector<8x1xf32>
    %cst_90 = arith.constant 9.99999974E-6 : f32
    %226 = vector.broadcast %cst_90 : f32 to vector<8x1xf32>
    %227 = arith.addf %225, %226 : vector<8x1xf32>
    %228 = math.rsqrt %227 : vector<8x1xf32>
    %229 = arith.mulf %143, %228 : vector<8x1xf32>
    %230 = arith.mulf %218, %229 : vector<8x1xf32>
    %231 = arith.subf %144, %230 : vector<8x1xf32>
    %232 = vector.broadcast %229 : vector<8x1xf32> to vector<8x256xf32>
    %233 = arith.mulf %214, %232 : vector<8x256xf32>
    %234 = vector.broadcast %231 : vector<8x1xf32> to vector<8x256xf32>
    %235 = arith.addf %233, %234 : vector<8x256xf32>
    %cst_91 = arith.constant 0.000000e+00 : f32
    %236 = vector.broadcast %cst_91 : f32 to vector<8x256xf32>
    %237 = arith.maximumf %235, %236 : vector<8x256xf32>
    %c0_92 = arith.constant 0 : index
    %c0_93 = arith.constant 0 : index
    %c0_94 = arith.constant 0 : index
    %238 = vector.load %arg5[%c0_92, %c0_93, %c0_94] : memref<1x8x256xf32, #tpu.memory_space<vmem>>, vector<1x8x256xf32>
    %239 = vector.shape_cast %238 : vector<1x8x256xf32> to vector<8x256xf32>
    %240 = vector.shape_cast %237 : vector<8x256xf32> to vector<1x8x256xf32>
    tpu.vector_store %arg5[%c0_92, %c0_93, %c0_94], %240 {strides = array<i32>} : memref<1x8x256xf32, #tpu.memory_space<vmem>>, vector<1x8x256xf32>,
    return
  }
  func.func @transform_0(%arg0: i32) -> (i32, i32, i32) {
    %c0_i32 = arith.constant 0 : i32
    %c0_i32_0 = arith.constant 0 : i32
    %c0_i32_1 = arith.constant 0 : i32
    return %arg0, %c0_i32, %c0_i32_0 : i32, i32, i32
  }
  func.func @transform_1(%arg0: i32) -> (i32, i32, i32) {
    %c0_i32 = arith.constant 0 : i32
    %c0_i32_0 = arith.constant 0 : i32
    %c0_i32_1 = arith.constant 0 : i32
    %c0_i32_2 = arith.constant 0 : i32
    return %c0_i32, %c0_i32_0, %c0_i32_1 : i32, i32, i32
  }
  func.func @transform_2(%arg0: i32) -> (i32, i32) {
    %c0_i32 = arith.constant 0 : i32
    %c0_i32_0 = arith.constant 0 : i32
    %c0_i32_1 = arith.constant 0 : i32
    return %c0_i32, %c0_i32_0 : i32, i32
  }
  func.func @transform_3(%arg0: i32) -> (i32, i32) {
    %c0_i32 = arith.constant 0 : i32
    %c0_i32_0 = arith.constant 0 : i32
    %c0_i32_1 = arith.constant 0 : i32
    return %c0_i32, %c0_i32_0 : i32, i32
  }
  func.func @transform_4(%arg0: i32) -> (i32, i32, i32) {
    %c0_i32 = arith.constant 0 : i32
    %c0_i32_0 = arith.constant 0 : i32
    %c0_i32_1 = arith.constant 0 : i32
    return %arg0, %c0_i32, %c0_i32_0 : i32, i32, i32
  }
}

</mosaic_0001>

<bundles_post_ra>
// kernel: tpu_custom_call.1
= control target key start
LH: loop header
LB: loop body
LE: loop exit
PB: predicated region body
PF: predicated region fallthrough
CT: control target
= control target key end

     0   :  { %9 = vsyncpa [#allocation3], 0  ;;  %s1642_s0 = inlined_call_operand.vmem [shape: f32[2,8,256], index: 0, kind: input, shape index: {}]   ;;  %s1643_s1 = inlined_call_operand.vmem [shape: bf16[9,8,8], index: 1, kind: input, shape index: {}]   ;;  %s1644_s2 = inlined_call_operand.vmem [shape: s32[2,256], index: 2, kind: input, shape index: {}]   ;;  %s1645_s3 = inlined_call_operand.vmem [shape: f32[8,2], index: 3, kind: input, shape index: {}]   ;;  %s1646_s4 = inlined_call_operand.hbm [shape: f32[2,8,256], index: 4, kind: output, shape index: {}]  }
   0x1   :  { %11 = vsyncpa [#allocation3 + $0x1], 0  ;;  %s1268_s15 = smov 0   ;;  %s1270_s16 = smov 0  }
   0x2   :  { %s1272_s17 = smov 0   ;;  %s1274_s18 = smov 0  }
   0x3 LB: > { %s1289_s19 = sadd.s32 4294967295, %s1229_s18   ;;  %s1034_s20 = sadd.s32 4294967294, %s1229_s18   ;;  %s1229_s18 = sphi %s1274_s18, %s1705_s18   ;;  %s1225_s17 = sphi %s1272_s17, %s1704_s17   ;;  %s1221_s16 = sphi %s1270_s16, %s1703_s16   ;;  %s1217_s15 = sphi %s1268_s15, %s1702_s15  }
   0x4   : > { %s1293_s21 = sadd.s32 1, %s1229_s18   ;;  %s113_s22 = sadd.s32 1, %s1225_s17 }
   0x5   : > { %s110_s23 = ssub.s32 %s1229_s18, %s1293_s21  ;;  %p123_p0 = scmp.ne.s32.totalorder %s1225_s17, %s1221_s16 }
   0x6   : > { %p111_p1 = scmp.eq.s32.totalorder %s110_s23, 0  ;;  %p124_p2 = scmp.eq.s32.totalorder %s1289_s19, 1 }
   0x7   : > { %p129_p3 = scmp.ne.s32.totalorder %s1221_s16, %s1217_s15  ;;  %p130_p4 = scmp.eq.s32.totalorder %s1034_s20, 1 }
   0x8   : > { %s1304_s24 = scalar_select %p111_p1, %s1225_s17, %s113_s22  }
   0x9   : > { %p1306_p5 = por %p124_p2, %p123_p0  ;;  %p1310_p6 = por %p130_p4, %p129_p3 }
   0xa   : > { %p1037_p7 = scmp.ge.s32.totalorder %s1229_s18, 1  ;;  %p165_p8 = scmp.lt.s32.totalorder %s1229_s18, 3 }
   0xc   : > { %p166_p9 = pnand %p1037_p7, %p165_p8 }
   0xd   : > { %p191_p10 = scmp.lt.s32.totalorder (!%p166_p9), %s1289_s19, 1  ;;  %s1232_s6 = smov (!%p166_p9), 32  }
   0xe   : > { %169 = sbr.rel (%p166_p9) target bundleno = 948 (0x3b4), region = 36  ;;  %s1233_s7 = smov (!%p166_p9), 30  }
   0xf   : > { %s1234_s8 = smov (!%p166_p9), 34   ;;  %s1235_s9 = smov (!%p166_p9), 2  }
  0x10   : > { %s1236_s10 = smov (!%p166_p9), 126   ;;  %s1237_s11 = smov (!%p166_p9), 98  }
  0x11   : > { %s1238_s12 = smov (!%p166_p9), 96   ;;  %s1239_s13 = smov (!%p166_p9), 94  }
  0x12   : > { %s1241_s30 = smov (!%p166_p9), 1  }
  0x13   : > { %v1231_v0 = vmov 0   ;;  %s192_s27 = scalar_select %p191_p10, %s1289_s19, 1  ;;  %v197_v5 = vld [vmem:[%s1644_s2] ss:$2 sm:$0x3]  ;;  %v210_v13 = vlaneseq }
  0x14   : > { %411 = vmatprep.mubr.bf16.mxu0 %v1231_v0  ;;  %461 = vmatprep.mubr.bf16.mxu1 %v1231_v0  ;;  %v1041_v6 = vld [vmem:[%s1644_s2 + $0x1] ss:$2 sm:$0x3]  ;;  %v200_v7 = vadd.s32 4294967294, %v197_v5  ;;  %v278_v12 = vadd.s32 2, %v197_v5  ;;  %vm251_vm9 = vcmp.ge.s32.totalorder %v197_v5, 0 }
  0x15   : > { %1165 = vset.pattern.permute.xlu1 %v1231_v0  ;;  %s1073_s28 = sshll.u32 %s192_s27, 4  ;;  %v235_v8 = vadd.s32 2, %v1041_v6  ;;  %vm220_vm4 = vcmp.ge.s32.totalorder %v1041_v6, 0  ;;  %vm221_vm5 = vcmp.lt.s32.totalorder %v1041_v6, 16  ;;  %v204_v10 = vadd.s32 4294967294, %v1041_v6 }
  0x16   : > { %s195_s5 = scalar_lea.vmem %s1642_s0, %s1073_s28  ;;  %vm201_vm0 = vcmp.ge.s32.totalorder %v200_v7, 0  ;;  %vm202_vm1 = vcmp.lt.s32.totalorder %v200_v7, 16  ;;  %vm1346_vm8 = vmand %vm220_vm4, %vm221_vm5  ;;  %vm252_vm10 = vcmp.lt.s32.totalorder %v197_v5, 16  ;;  %vm279_vm15 = vcmp.ge.s32.totalorder %v278_v12, 0  ;;  %v318_v46 = vld [vmem:[%s1643_s1] sm:$0xf] }
  0x17   : > { %v1324_v1 = vld [vmem:[%s195_s5] sm:$0xff]  ;;  %v1326_v2 = vld [vmem:[%s195_s5 + $0x8] sm:$0xff]  ;;  %vm236_vm2 = vcmp.ge.s32.totalorder %v235_v8, 0  ;;  %vm237_vm3 = vcmp.lt.s32.totalorder %v235_v8, 16  ;;  %vm1338_vm6 = vmand %vm201_vm0, %vm202_vm1  ;;  %vm205_vm12 = vcmp.ge.s32.totalorder %v204_v10, 0  ;;  %vm206_vm13 = vcmp.lt.s32.totalorder %v204_v10, 16 }
  0x18   : > { %v1125_v3 = vpack.i.bf16 %v1324_v1, %v1326_v2  ;;  %v1145_v4 = vpack.i.bf16 %v1326_v2, %v1324_v1  ;;  %vm1342_vm7 = vmand %vm236_vm2, %vm237_vm3  ;;  %vm280_vm0 = vcmp.lt.s32.totalorder %v278_v12, 16  ;;  %v211_v15 = vshrl.u32 %v210_v13, 7  ;;  %s188_s5 = sand.u32 1, %s1221_s16  }
  0x19   : > { %vm239_vm11 = vmand %vm1338_vm6, %vm1342_vm7  ;;  %v603_v41 = vpack.c.bf16 %v1326_v2, %v1326_v2  ;;  %v602_v43 = vpack.c.bf16 %v1324_v1, %v1324_v1  ;;  %v1043_v2 = vld [vmem:[%s1643_s1 + $0x8] sm:$0xf] }
  0x1a   : > { %1126 = vrot.lane.b32.xlu0 %v1125_v3, %s1232_s6  ;;  %1136 = vrot.lane.b32.xlu1 %v1125_v3, %s1233_s7  ;;  %vm223_vm14 = vmand %vm1338_vm6, %vm1346_vm8  ;;  %v1374_v19 = vsub.s32 1, %v211_v15  ;;  %v240_v20 = vsel %vm239_vm11, 1, %v1231_v0  ;;  %v1377_v21 = vsub.s32 0, %v211_v15  ;;  %vm475_vm11 = vcmask 244736   ;;  %s1038_s6 = sshll.u32 %s188_s5, 4  ;;  %s1074_s7 = sshll.u32 %s1289_s19, 8 }
  0x1b   : > { %vm1358_vm1 = vmand %vm251_vm9, %vm252_vm10  ;;  %v224_v22 = vsel %vm223_vm14, 1, %v1231_v0  ;;  %s1242_s19 = smov [#allocation2]  }
  0x1c   : > { %vm1362_vm2 = vmand %vm205_vm12, %vm206_vm13  ;;  %v248_v23 = vrot.slane %v240_v20, %v1374_v19  ;;  %v232_v26 = vrot.slane %v224_v22, %v1374_v19  ;;  %v228_v27 = vrot.slane %v224_v22, %v1377_v21  ;;  %vm359_vm12 = vcmask 261120   ;;  %s1173_s20 = sshll.u32 %s1242_s19, 4  ;;  %s1174_s20 = int_to_ptr.vmem [resolvable:$false] %s1173_s20 }
  0x1d   : > { %vm1366_vm3 = vmand %vm279_vm15, %vm280_vm0  ;;  %v244_v28 = vrot.slane %v240_v20, %v1377_v21  ;;  %vm372_vm13 = vcmask 1043456   ;;  %vm726_vm15 = vcmask 801792   ;;  %s1175_s22 = scalar_lea.vmem %s1174_s20, 512 }
  0x1e   : > { %1131 = vrot.lane.b32.xlu0 %v1125_v3, %s1234_s8  ;;  %1141 = vrot.lane.b32.xlu1 %v1125_v3, %s1235_s9  ;;  %vm254_vm4 = vmand %vm1358_vm1, %vm1362_vm2  ;;  %vm1409_vm14 = vcmp.eq.s32.totalorder %v248_v23, 1  ;;  %vm1416_vm0 = vcmp.eq.s32.totalorder %v232_v26, 1  ;;  %v1042_v26 = vld [vmem:[%s1643_s1 + $0x4] sm:$0xf]  ;;  %v608_v62 = vsel %vm372_vm13, %v602_v43, 0  ;;  %s190_s8 = scalar_lea.vmem [#allocation2], %s1038_s6 }
  0x1f   : > { %vm208_vm5 = vmand %vm1338_vm6, %vm1362_vm2  ;;  %v255_v24 = vsel %vm254_vm4, 1, %v1231_v0  ;;  %v1044_v43 = vld [vmem:[%s1643_s1 + $0xc] sm:$0xf]  ;;  %s975_s9 = sshll.u32 %s190_s8, 4  ;;  %s976_s9 = int_to_ptr.vmem [resolvable:$true] %s975_s9 }
  0x20   : > { %vm266_vm9 = vmand %vm1358_vm1, %vm1342_vm7  ;;  %v209_v25 = vsel %vm208_vm5, 1, %v1231_v0  ;;  %v263_v30 = vrot.slane %v255_v24, %v1374_v19  ;;  %v259_v32 = vrot.slane %v255_v24, %v1377_v21  ;;  %vm1420_vm1 = vcmp.eq.s32.totalorder %v228_v27, 1  ;;  %s1169_s14 = scalar_lea.vmem %s976_s9, 256  ;;  %p1176_p0 = scmp.lt.s32.totalorder %s976_s9, %s1174_s20 }
  0x21   : > { %vm282_vm10 = vmand %vm1366_vm3, %vm1362_vm2  ;;  %v267_v29 = vsel %vm266_vm9, 1, %v1231_v0  ;;  %v217_v31 = vrot.slane %v209_v25, %v1374_v19  ;;  %v213_v38 = vrot.slane %v209_v25, %v1377_v21  ;;  %vm1426_vm2 = vcmp.eq.s32.totalorder %v244_v28, 1  ;;  %p1170_p11 = scmp.ne.s32.totalorder %s976_s9, %s1169_s14  ;;  %p1177_p1 = scmp.lt.s32.totalorder %s1175_s22, %s1169_s14 }
  0x22   : > { %1146 = vrot.lane.b32.xlu0 %v1145_v4, %s1236_s10  ;;  %1151 = vrot.lane.b32.xlu1 %v1145_v4, %s1237_s11  ;;  %vm294_vm6 = vmand %vm1366_vm3, %vm1346_vm8  ;;  %v1407_v33 = vsel %vm282_vm10, 1, %v1231_v0  ;;  %v275_v39 = vrot.slane %v267_v29, %v1374_v19  ;;  %vm1436_vm4 = vcmp.eq.s32.totalorder %v263_v30, 1  ;;  %vm1444_vm10 = vcmp.eq.s32.totalorder %v259_v32, 1 }
  0x23   : > { %v1414_v35 = vsel %vm294_vm6, 1, %v1231_v0  ;;  %v291_v42 = vrot.slane %v1407_v33, %v1374_v19  ;;  %vm1440_vm9 = vcmp.eq.s32.totalorder %v217_v31, 1  ;;  %v271_v49 = vrot.slane %v267_v29, %v1377_v21  ;;  %p1171_p12 = pnand %p1170_p11, %p1306_p5  ;;  %p1178_p2 = por %p1177_p1, %p1176_p0 }
  0x24   : > { %vm1449_vm8 = vcmp.eq.s32.totalorder %v213_v38, 1  ;;  %vm1453_vm5 = vcmp.eq.s32.totalorder %v275_v39, 1  ;;  %v303_v56 = vrot.slane %v1414_v35, %v1374_v19  ;;  %v287_v57 = vrot.slane %v1407_v33, %v1377_v21 }
  0x25   : > { %vm1465_vm6 = vcmp.eq.s32.totalorder %v291_v42, 1  ;;  %p1172_p13 = pneg %p1171_p12 }
  0x26   : > { %1156 = vrot.lane.b32.xlu0 %v1145_v4, %s1238_s12  ;;  %1161 = vrot.lane.b32.xlu1 %v1145_v4, %s1239_s13  ;;  %s1607_s12 = scalar_lea.hbm %s1646_s4, %s1074_s7  ;;  %s961_s13 = scalar_lea.sflag [#allocation3], %s188_s5 }
  0x27   : > { %p1179_p3 = pnand %p1178_p2, %p1172_p13 }
  0x8c   : > { %v1127_v44 = vpop.permute.xlu0 %1126  ;;  %v1137_v45 = vpop.permute.xlu1 %1136 }
  0x8d   : > { %v1129_v50 = vunpack.i.h.bf16 %v1127_v44  ;;  %v1128_v51 = vunpack.i.l.bf16 %v1127_v44  ;;  %v1139_v52 = vunpack.i.h.bf16 %v1137_v45  ;;  %v1138_v53 = vunpack.i.l.bf16 %v1137_v45 }
  0x8f   : > { %v476_v58 = vsel %vm475_vm11, %v1139_v52, %v1138_v53  ;;  %v479_v59 = vsel %vm475_vm11, %v1138_v53, %v1139_v52  ;;  %v360_v60 = vsel %vm359_vm12, %v1129_v50, %v1128_v51  ;;  %v363_v61 = vsel %vm359_vm12, %v1128_v51, %v1129_v50  ;;  %vm306_vm12 = vmand %vm1366_vm3, %vm1342_vm7 }
  0x90   : > { %v481_v63 = vsel %vm1409_vm14, %v476_v58, 0.0  ;;  %v1132_v3 = vpop.permute.xlu0 %1131  ;;  %v365_v4 = vsel %vm1416_vm0, %v360_v60, 0.0  ;;  %v364_v5 = vsel %vm1420_vm1, %v363_v61, 0.0  ;;  %v1142_v6 = vpop.permute.xlu1 %1141  ;;  %v480_v7 = vsel %vm1426_vm2, %v479_v59, 0.0 }
  0x91   : > { %vm1477_vm11 = vcmp.eq.s32.totalorder %v271_v49, 1  ;;  %v1134_v9 = vunpack.i.h.bf16 %v1132_v3  ;;  %v1133_v10 = vunpack.i.l.bf16 %v1132_v3  ;;  %v367_v12 = vpack.c.bf16 %v365_v4, %v365_v4 }
  0x92   : > { %v366_v13 = vpack.c.bf16 %v364_v5, %v364_v5  ;;  %vm792_vm14 = vcmask 785408   ;;  %v1144_v14 = vunpack.i.h.bf16 %v1142_v6  ;;  %v1143_v15 = vunpack.i.l.bf16 %v1142_v6 }
  0x93   : > { %v483_v16 = vpack.c.bf16 %v481_v63, %v481_v63  ;;  %v482_v17 = vpack.c.bf16 %v480_v7, %v480_v7  ;;  %1050 = vmatprep.subr.msk.bf16.mxu0 %vm372_vm13, %v367_v12  ;;  %vm1683_vm0 = vcmask 277504   ;;  %vm1489_vm2 = vcmp.eq.s32.totalorder %v303_v56, 1 }
  0x94   : > { %v374_v20 = vsel %vm372_vm13, %v366_v13, 0  ;;  %v346_v22 = vsel %vm1683_vm0, %v1134_v9, %v1133_v10  ;;  %vm1684_vm1 = vmmov %vm1683_vm0  ;;  %v1494_v23 = vsel %vm306_vm12, 1, %v1231_v0  ;;  %vm1687_vm7 = vcmask 15360   ;;  %v1147_v29 = vpop.permute.xlu0 %1146  ;;  %v1152_v30 = vpop.permute.xlu1 %1151 }
  0x95   : > { %v349_v11 = vsel %vm1684_vm1, %v1133_v10, %v1134_v9  ;;  %394 = vmatpush1.bf16.msra.mxu0 %v374_v20  ;;  %v542_v24 = vsel %vm1687_vm7, %v1144_v14, %v1143_v15  ;;  %vm1688_vm3 = vmmov %vm1687_vm7  ;;  %v351_v27 = vsel %vm1440_vm9, %v346_v22, 0.0  ;;  %v488_v34 = vsel %vm372_vm13, %v482_v17, 0 }
  0x96   : > { %v545_v25 = vsel %vm1688_vm3, %v1143_v15, %v1144_v14  ;;  %v350_v28 = vsel %vm1449_vm8, %v349_v11, 0.0  ;;  %v547_v31 = vsel %vm1436_vm4, %v542_v24, 0.0  ;;  %v353_v32 = vpack.c.bf16 %v351_v27, %v351_v27  ;;  %1054 = vmatprep.subr.msk.bf16.mxu0 %vm372_vm13, %v483_v16  ;;  %v1046_v11 = vld [vmem:[%s1643_s1 + $0x14] sm:$0xf]  ;;  %v1047_v24 = vld [vmem:[%s1643_s1 + $0x18] sm:$0xf] }
  0x97   : > { %v352_v33 = vpack.c.bf16 %v350_v28, %v350_v28  ;;  %v549_v36 = vpack.c.bf16 %v547_v31, %v547_v31  ;;  %v1149_v37 = vunpack.i.h.bf16 %v1147_v29  ;;  %v1148_v38 = vunpack.i.l.bf16 %v1147_v29  ;;  %v1049_v27 = vld [vmem:[%s1643_s1 + $0x20] sm:$0xf] }
  0x98   : > { %v546_v39 = vsel %vm1444_vm10, %v545_v25, 0.0  ;;  %vm1689_vm9 = vcmask 64512   ;;  %1052 = vmatprep.subr.msk.bf16.mxu1 %vm372_vm13, %v353_v32  ;;  %v1154_v44 = vunpack.i.h.bf16 %v1152_v30  ;;  %v1153_v45 = vunpack.i.l.bf16 %v1152_v30  ;;  %v1157_v49 = vpop.permute.xlu0 %1156  ;;  %v1162_v51 = vpop.permute.xlu1 %1161 }
  0x99   : > { %1051 = vmatmul.mubr.msk.bf16.vlgmr.msra.gmra.mxu0 %vm1689_vm9, %v1042_v26  ;;  %v424_v40 = vsel %vm372_vm13, %v352_v33, 0  ;;  %v548_v42 = vpack.c.bf16 %v546_v39, %v546_v39  ;;  %vm1690_vm8 = vcmask 1031168   ;;  %v315_v50 = vrot.slane %v1494_v23, %v1374_v19  ;;  %v1048_v26 = vld [vmem:[%s1643_s1 + $0x1c] sm:$0xf] }
  0x9a   : > { %444 = vmatpush1.bf16.msra.mxu1 %v424_v40  ;;  %508 = vmatpush1.bf16.msra.mxu0 %v488_v34  ;;  %v661_v47 = vsel %vm1690_vm8, %v1148_v38, %v1149_v37  ;;  %vm1691_vm4 = vmmov %vm1690_vm8  ;;  %vm1521_vm10 = vcmp.eq.s32.totalorder %v287_v57, 1  ;;  %v731_v56 = vsel %vm726_vm15, %v1154_v44, %v1153_v45  ;;  %v299_v58 = vrot.slane %v1414_v35, %v1377_v21 }
  0x9b   : > { %v665_v48 = vsel %vm1691_vm4, %v1149_v37, %v1148_v38  ;;  %1056 = vmatprep.subr.msk.bf16.mxu1 %vm372_vm13, %v549_v36  ;;  %525 = vmatprep.mubr.bf16.mxu0 %v1231_v0  ;;  %v554_v54 = vsel %vm372_vm13, %v548_v42, 0  ;;  %v733_v19 = vsel %vm1465_vm6, %v731_v56, 0.0  ;;  %v1159_v55 = vunpack.i.h.bf16 %v1157_v49 }
  0x9c   : > { %v667_v53 = vsel %vm1453_vm5, %v665_v48, 0.0  ;;  %1058 = vmatprep.subr.msk.bf16.mxu0 %vm372_vm13, %v603_v41  ;;  %v1158_v59 = vunpack.i.l.bf16 %v1157_v49  ;;  %vm1694_vm5 = vmmov %vm1689_vm9  ;;  %v727_v60 = vsel %vm726_vm15, %v1153_v45, %v1154_v44  ;;  %v666_v61 = vsel %vm1477_vm11, %v661_v47, 0.0 }
  0x9d   : > { %v669_v57 = vpack.c.bf16 %v667_v53, %v667_v53  ;;  %1053 = vmatmul.mubr.msk.bf16.vlgmr.msra.gmra.mxu1 %vm1694_vm5, %v318_v46  ;;  %v1164_v63 = vunpack.i.h.bf16 %v1162_v51  ;;  %v1163_v35 = vunpack.i.l.bf16 %v1162_v51  ;;  %vm858_vm6 = vcmask 769024   ;;  %vm1695_vm11 = vmmov %vm1694_vm5 }
  0x9e   : > { %574 = vmatpush1.bf16.msra.mxu1 %v554_v54  ;;  %591 = vmatprep.mubr.bf16.mxu1 %v1231_v0  ;;  %v797_v41 = vsel %vm792_vm14, %v1159_v55, %v1158_v59  ;;  %v668_v3 = vpack.c.bf16 %v666_v61, %v666_v61  ;;  %v735_v4 = vpack.c.bf16 %v733_v19, %v733_v19  ;;  %vm317_vm15 = vcmp.eq.s32.totalorder %v315_v50, 1  ;;  %vm1697_vm1 = vmmov %vm1694_vm5 }
  0x9f   : > { %1060 = vmatprep.subr.msk.bf16.mxu1 %vm372_vm13, %v669_v57  ;;  %v799_v5 = vsel %vm1489_vm2, %v797_v41, 0.0  ;;  %v732_v6 = vsel %vm1521_vm10, %v727_v60, 0.0  ;;  %v793_v7 = vsel %vm792_vm14, %v1158_v59, %v1159_v55  ;;  %v863_v8 = vsel %vm858_vm6, %v1164_v63, %v1163_v35  ;;  %vm1696_vm14 = vmmov %vm1694_vm5 }
  0xa0   : > { %vm304_vm12 = vcmp.eq.s32.totalorder %v299_v58, 1  ;;  %v311_v1 = vrot.slane %v1494_v23, %v1377_v21  ;;  %v674_v9 = vsel %vm372_vm13, %v668_v3, 0  ;;  %v734_v10 = vpack.c.bf16 %v732_v6, %v732_v6  ;;  %v1045_v21 = vld [vmem:[%s1643_s1 + $0x10] sm:$0xf]  ;;  %vm1698_vm2 = vmmov %vm1697_vm1 }
  0xa1   : > { %1055 = vmatmul.mubr.msk.bf16.vlgmr.msra.gmra.mxu0 %vm1695_vm11, %v1043_v2  ;;  %v801_v12 = vpack.c.bf16 %v799_v5, %v799_v5  ;;  %v865_v13 = vsel %vm317_vm15, %v863_v8, 0.0  ;;  %v798_v14 = vsel %vm304_vm12, %v793_v7, 0.0  ;;  %v859_v15 = vsel %vm858_vm6, %v1163_v35, %v1164_v63  ;;  %vm1699_vm7 = vmmov %vm1697_vm1 }
  0xa2   : > { %628 = vmatpush1.bf16.msra.mxu0 %v608_v62  ;;  %645 = vmatprep.mubr.bf16.mxu0 %v1231_v0  ;;  %vm316_vm0 = vcmp.eq.s32.totalorder %v311_v1, 1  ;;  %v740_v16 = vsel %vm372_vm13, %v734_v10, 0  ;;  %v800_v17 = vpack.c.bf16 %v798_v14, %v798_v14  ;;  %v867_v20 = vpack.c.bf16 %v865_v13, %v865_v13  ;;  %vm1700_vm3 = vmmov %vm1697_vm1 }
  0xa3   : > { %1062 = vmatprep.subr.msk.bf16.mxu0 %vm372_vm13, %v735_v4  ;;  %v864_v22 = vsel %vm316_vm0, %v859_v15, 0.0  ;;  %vm1701_vm9 = vmmov %vm1697_vm1 }
  0xa4   : > { %v806_v18 = vsel %vm372_vm13, %v800_v17, 0  ;;  %v866_v23 = vpack.c.bf16 %v864_v22, %v864_v22 }
  0xa5   : > { %1057 = vmatmul.mubr.msk.bf16.vlgmr.msra.gmra.mxu1 %vm1696_vm14, %v1044_v43 }
  0xa6   : > { %694 = vmatpush1.bf16.msra.mxu1 %v674_v9  ;;  %711 = vmatprep.mubr.bf16.mxu1 %v1231_v0  ;;  %v872_v25 = vsel %vm372_vm13, %v866_v23, 0 }
  0xa7   : > { %1064 = vmatprep.subr.msk.bf16.mxu1 %vm372_vm13, %v801_v12 }
  0xa9   : > { %1059 = vmatmul.mubr.msk.bf16.vlgmr.msra.gmra.mxu0 %vm1697_vm1, %v1045_v21 }
  0xaa   : > { %760 = vmatpush1.bf16.msra.mxu0 %v740_v16  ;;  %777 = vmatprep.mubr.bf16.mxu0 %v1231_v0 }
  0xab   : > { %1066 = vmatprep.subr.msk.bf16.mxu0 %vm372_vm13, %v867_v20 }
  0xad   : > { %1061 = vmatmul.mubr.msk.bf16.vlgmr.msra.gmra.mxu1 %vm1698_vm2, %v1046_v11 }
  0xae   : > { %826 = vmatpush1.bf16.msra.mxu1 %v806_v18  ;;  %843 = vmatprep.mubr.bf16.mxu1 %v1231_v0 }
  0xb1   : > { %1063 = vmatmul.mubr.msk.bf16.vlgmr.msra.gmra.mxu0 %vm1699_vm7, %v1047_v24 }
  0xb2   : > { %892 = vmatpush1.bf16.msra.mxu0 %v872_v25  ;;  %909 = vmatprep.mubr.bf16.mxu0 %v1231_v0 }
  0xb5   : > { %1065 = vmatmul.mubr.msk.bf16.vlgmr.msra.gmra.mxu1 %vm1700_vm3, %v1048_v26 }
  0xb9   : > { %1067 = vmatmul.mubr.msk.bf16.vlgmr.msra.gmra.mxu0 %vm1701_vm9, %v1049_v27  ;;  %v1240_v27 = vmov 1  }
  0xba   : > { %1166 = vset.pattern.permute.xlu0 %v1240_v27 }
 0x159   : > { %v413_v28 = vpop.f32.mrf.mxu0 }
 0x15b   : > { %v415_v29 = vpop.f32.mrf.mxu0 }
 0x15d   : > { %v417_v30 = vpop.f32.mrf.mxu0  ;;  %v463_v31 = vpop.f32.mrf.mxu1 }
 0x15e   : > { %v464_v50 = vadd.f32 %v463_v31, %v413_v28  ;;  %v335_v28 = vld [vmem:[%s1645_s3] sm:$0xff] }
 0x15f   : > { %v418_v32 = vpop.f32.mrf.mxu0  ;;  %v465_v33 = vpop.f32.mrf.mxu1 }
 0x160   : > { %v466_v51 = vadd.f32 %v465_v33, %v415_v29 }
 0x161   : > { %v467_v34 = vpop.f32.mrf.mxu1  ;;  %v527_v36 = vpop.f32.mrf.mxu0 }
 0x162   : > { %v534_v54 = vadd.f32 %v527_v36, %v464_v50 }
 0x163   : > { %v468_v37 = vpop.f32.mrf.mxu1  ;;  %v529_v38 = vpop.f32.mrf.mxu0 }
 0x164   : > { %v535_v56 = vadd.f32 %v529_v38, %v466_v51 }
 0x165   : > { %v531_v39 = vpop.f32.mrf.mxu0  ;;  %v593_v0 = vpop.f32.mrf.mxu1 }
 0x166   : > { %v600_v57 = vadd.f32 %v593_v0, %v534_v54 }
 0x167   : > { %v532_v40 = vpop.f32.mrf.mxu0  ;;  %v595_v42 = vpop.f32.mrf.mxu1 }
 0x168   : > { %v601_v55 = vadd.f32 %v595_v42, %v535_v56 }
 0x169   : > { %v597_v44 = vpop.f32.mrf.mxu1  ;;  %v647_v45 = vpop.f32.mrf.mxu0 }
 0x16a   : > { %v654_v61 = vadd.f32 %v647_v45, %v600_v57 }
 0x16b   : > { %v598_v46 = vpop.f32.mrf.mxu1  ;;  %v649_v47 = vpop.f32.mrf.mxu0 }
 0x16c   : > { %v655_v63 = vadd.f32 %v649_v47, %v601_v55 }
 0x16d   : > { %v651_v48 = vpop.f32.mrf.mxu0  ;;  %v713_v49 = vpop.f32.mrf.mxu1 }
 0x16e   : > { %v720_v41 = vadd.f32 %v713_v49, %v654_v61 }
 0x16f   : > { %v652_v52 = vpop.f32.mrf.mxu0  ;;  %v715_v53 = vpop.f32.mrf.mxu1 }
 0x170   : > { %v721_v62 = vadd.f32 %v715_v53, %v655_v63 }
 0x171   : > { %v717_v58 = vpop.f32.mrf.mxu1  ;;  %v779_v19 = vpop.f32.mrf.mxu0 }
 0x172   : > { %v786_v5 = vadd.f32 %v779_v19, %v720_v41 }
 0x173   : > { %v718_v59 = vpop.f32.mrf.mxu1  ;;  %v781_v60 = vpop.f32.mrf.mxu0 }
 0x174   : > { %v787_v6 = vadd.f32 %v781_v60, %v721_v62 }
 0x175   : > { %v783_v35 = vpop.f32.mrf.mxu0  ;;  %v845_v2 = vpop.f32.mrf.mxu1 }
 0x176   : > { %v852_v1 = vadd.f32 %v845_v2, %v786_v5 }
 0x177   : > { %v784_v3 = vpop.f32.mrf.mxu0  ;;  %v847_v4 = vpop.f32.mrf.mxu1 }
 0x178   : > { %v853_v43 = vadd.f32 %v847_v4, %v787_v6 }
 0x179   : > { %v849_v7 = vpop.f32.mrf.mxu1  ;;  %v911_v8 = vpop.f32.mrf.mxu0 }
 0x17a   : > { %v918_v12 = vadd.f32 %v911_v8, %v852_v1 }
 0x17b   : > { %v850_v9 = vpop.f32.mrf.mxu1  ;;  %v913_v10 = vpop.f32.mrf.mxu0 }
 0x17c   : > { %v919_v13 = vadd.f32 %v913_v10, %v853_v43 }
 0x17d   : > { %v915_v14 = vpop.f32.mrf.mxu0 }
 0x17e   : > { %v920_v15 = vadd.f32 %v919_v13, %v918_v12 }
 0x17f   : > { %v916_v21 = vpop.f32.mrf.mxu0 }
 0x180   : > { %921 = vadd.xlane.f32.xlu0 %v920_v15 }
 0x209   : > { %v922_v16 = vpop.xlane.xlu0 %921 }
 0x20a   : > { %v924_v17 = vmul.f32 0.00390625, %v922_v16 }
 0x20c   : > { %v925_v20 = vsub.f32 %v918_v12, %v924_v17  ;;  %v926_v22 = vsub.f32 %v919_v13, %v924_v17 }
 0x20e   : > { %v927_v11 = vmul.f32 %v925_v20, %v925_v20  ;;  %v928_v18 = vmul.f32 %v926_v22, %v926_v22 }
 0x210   : > { %v929_v23 = vadd.f32 %v928_v18, %v927_v11 }
 0x212   : > { %930 = vadd.xlane.f32.xlu1 %v929_v23 }
 0x29b   : > { %v931_v24 = vpop.xlane.xlu1 %930 }
 0x29c   : > { %v932_v25 = vmul.f32 0.00390625, %v931_v24 }
 0x29e   : > { %v933_v26 = vadd.f32 1e-05, %v932_v25 }
 0x2a0   : > { %1167 = vrsqrt.f32 %v933_v26 }
 0x2ad   : > { %v1168_v29 = vpop.eup %1167 }
 0x2ae   : > { %v935_v30 = vmul.f32 %v1168_v29, %v335_v28 }
 0x2b0   : > { %944 = vperm.xlu1 %1165, %v935_v30   ;;  %v936_v31 = vmul.f32 %v935_v30, %v924_v17 }
 0x2b2   : > { %938 = vrot.lane.b32.xlu0 %v936_v31, %s1241_s30 }
 0x324   : > { %v939_v32 = vpop.permute.xlu0 %938 }
 0x325   : > { %v941_v33 = vsub.f32 %v335_v28, %v939_v32 }
 0x327   : > { %951 = vperm.xlu0 %1166, %v941_v33  }
 0x32b   : > { %v945_v34 = vpop.permute.xlu1 %944 }
 0x32c   : > { %v947_v36 = vmul.f32 %v945_v34, %v918_v12  ;;  %v948_v37 = vmul.f32 %v945_v34, %v919_v13 }
 0x3a2   : > { %v952_v38 = vpop.permute.xlu0 %951 }
 0x3a3   : > { %v954_v39 = vadd.f32 %v952_v38, %v947_v36  ;;  %v955_v0 = vadd.f32 %v952_v38, %v948_v37 }
 0x3a5   : > { %v956_v40 = vmax.f32 %v954_v39, 0.0  ;;  %v957_v42 = vmax.f32 %v955_v0, 0.0 }
 0x3a7   : > { %958 = vst [vmem:[%s190_s8] sm:$0xff] %v956_v40  ;;  %959 = vst [vmem:[%s190_s8 + $0x8] sm:$0xff] %v957_v42 }
 0x3a8   : > { %1182 = shalt.err (!%p1179_p3)
}
 0x3a9   : > { %s1183_s23 = scalar_lea.hbm %s1607_s12, 256  ;;  %s1187_s29 = scalar_lea.hbm %s1646_s4, 512 }
 0x3aa   : > { %p1184_p4 = scmp.ne.s32.totalorder %s1607_s12, %s1183_s23  ;;  %p1188_p9 = scmp.lt.s32.totalorder %s1607_s12, %s1646_s4 }
 0x3ab   : > { %p1189_p10 = scmp.lt.s32.totalorder %s1187_s29, %s1183_s23 }
 0x3ac   : > { %p1185_p7 = pnand %p1184_p4, %p1306_p5 }
 0x3ad   : > { %p1190_p11 = por %p1189_p10, %p1188_p9 }
 0x3ae   : > { %p1186_p8 = pneg %p1185_p7 }
 0x3b0   : > { %p1191_p12 = pnand %p1190_p11, %p1186_p8 }
 0x3b2   : > { %1194 = shalt.err (!%p1191_p12)
}
 0x3b3   : > { %1075 = dma.vmem_to_hbm [thread:$0]  (%p1306_p5), %s976_s9, 256, %s1607_s12, %s961_s13  }
 0x3b4 PF: > { %p1081_p13 = scmp.ge.s32.totalorder %s1229_s18, 2  ;;  %s987_s6 = sand.u32 1, %s1217_s15  }
 0x3b5   : > { %s988_s7 = scalar_lea.sflag [#allocation3], %s987_s6 }
 0x3b6   : > { %p1078_p0 = pnand %p1081_p13, %p1310_p6 }
 0x3b8   : > { %p1079_p1 = pneg %p1078_p0 }
 0x3ba   : > { %1212 = dma.done.wait (%p1079_p1), %s988_s7, 256  }
 0x3bb   : > { %1214 = vsyncadd (%p1079_p1), %s988_s7, 4294967040  ;;  %p14_p2 = scmp.ge.s32.totalorder %s1293_s21, 4   ;;  %s1702_s15 = smov %s1221_s16 }
 0x3bc   : > { %s1703_s16 = smov %s1225_s17  ;;  %s1704_s17 = smov %s1304_s24 }
 0x3bd   : > { %s1705_s18 = smov %s1293_s21  ;;  %16 = sbr.rel (!%p14_p2) target bundleno = 3 (0x3), region = 80 }
 0x3c2   :  { %993 = vsyncpa [#allocation3], 1 }
 0x3c3   :  { %995 = vsyncpa [#allocation3 + $0x1], 1 }

</bundles_post_ra>
